<compile_context>
chip_gen: v7x
topology: tpu7x:2x2x1
jax: 0.10.0
libtpu: 0.0.40
codegen_flags: <defaults>
</compile_context>

<pallas_src>
import jax
import jax.numpy as jnp
from jax.experimental import pallas as pl
from jax.experimental.pallas import tpu as pltpu


def conv3x3_leakyrelu_kernel(x_ref, w_ref, b_ref, o_ref):
    """Fused 3x3 conv (stride 1, pad 1) + bias + LeakyReLU(0.2), one matmul.

    x_ref: (M_TILE, K_PAD)   bf16  rows = (n, h); K = 3 kh-taps x (W+2)*Cin, zero-padded
    w_ref: (K_PAD, W*Cout)   bf16  banded (Toeplitz) weights, kh taps concatenated along K
    b_ref: (1, W*Cout)       f32   bias tiled over the packed (w, cout) lane axis
    o_ref: (M_TILE, W*Cout)  f32   lane-dense output slab (128 lanes here)
    """
    acc = jnp.dot(x_ref[...], w_ref[...], preferred_element_type=jnp.float32)
    y = acc + b_ref[...]                      # (1, W*Cout) broadcasts over rows
    o_ref[...] = jnp.maximum(y, 0.2 * y).astype(o_ref.dtype)


def _build_banded_weights(weight, W, k_pad):
    """(Cout, Cin, 3, 3) -> (k_pad, W*Cout) banded matmul operand.

    Row index kh*(W+2)*Cin + wp*Cin + ci, column index w*Cout + co holds
    weight[co, ci, kh, wp - w] when 0 <= wp - w <= 2, else 0 -- so a single
    matmul realizes the kh/kw shifts, the Cin reduction and the Cout fan-out
    with a lane-dense output.  Rows >= 3*(W+2)*Cin are zero padding.
    """
    Cout, Cin, _, _ = weight.shape
    wp = jnp.arange(W + 2)[:, None, None, None]    # (W+2, 1,   1, 1)
    ci = jnp.arange(Cin)[None, :, None, None]      # (1,   Cin, 1, 1)
    w_ = jnp.arange(W)[None, None, :, None]        # (1,   1,   W, 1)
    co = jnp.arange(Cout)[None, None, None, :]     # (1,   1,   1, Cout)
    kw = wp - w_                                   # (W+2, 1,   W, 1)
    valid = (kw >= 0) & (kw <= 2)
    kwc = jnp.clip(kw, 0, 2)
    mats = []
    for kh in range(3):
        g = weight[co, ci, kh, kwc]                # (W+2, Cin, W, Cout) gather
        g = jnp.where(valid, g, jnp.zeros_like(g))
        mats.append(g.reshape((W + 2) * Cin, W * Cout))
    w_kcat = jnp.concatenate(mats, axis=0)         # (3*(W+2)*Cin, W*Cout)
    return jnp.pad(w_kcat, ((0, k_pad - w_kcat.shape[0]), (0, 0)))


@jax.jit
def conv3x3_pallas(x_nchw, weight, bias):
    """x_nchw: (N, Cin, H, W), weight: (Cout, Cin, 3, 3), bias: (Cout,)."""
    N, Cin, H, W = x_nchw.shape
    Cout = weight.shape[0]

    K = 3 * (W + 2) * Cin                      # 216
    K_PAD = ((K + 127) // 128) * 128           # 256: fills an MXU pass on v6e/v7x
    M = N * H                                  # batch fused into the matmul rows
    M_TILE = M if M <= 256 else 256            # single tile at toy sizes
    assert M % M_TILE == 0

    # Activation relayout (fuses to one copy under jit): NCHW -> zero-padded
    # channel-minor rows, then the 3 kh row taps concatenated along K.
    x_nhwc = jnp.transpose(x_nchw, (0, 2, 3, 1))
    x_pad = jnp.pad(x_nhwc, ((0, 0), (1, 1), (1, 1), (0, 0)))
    x_rows = x_pad.reshape(N, H + 2, (W + 2) * Cin)
    x_k = jnp.concatenate([x_rows[:, kh:kh + H, :] for kh in range(3)], axis=-1)
    x_k = jnp.pad(x_k, ((0, 0), (0, 0), (0, K_PAD - K)))
    x_k = x_k.reshape(M, K_PAD).astype(jnp.bfloat16)           # bf16 operands, f32 accum

    # One-time parameter prep (would be hoisted / cached per model in practice).
    w_kcat = _build_banded_weights(weight, W, K_PAD).astype(jnp.bfloat16)   # (256, 128)
    b_tiled = jnp.tile(bias, (W,)).reshape(1, W * Cout).astype(jnp.float32)  # (1, 128)

    out_rows = pl.pallas_call(
        conv3x3_leakyrelu_kernel,
        out_shape=jax.ShapeDtypeStruct((M, W * Cout), jnp.float32),
        grid=(M // M_TILE,),
        in_specs=[
            pl.BlockSpec((M_TILE, K_PAD), lambda i: (i, 0),
                         memory_space=pltpu.MemorySpace.VMEM),
            pl.BlockSpec((K_PAD, W * Cout), lambda i: (0, 0),
                         memory_space=pltpu.MemorySpace.VMEM),
            pl.BlockSpec((1, W * Cout), lambda i: (0, 0),
                         memory_space=pltpu.MemorySpace.VMEM),
        ],
        out_specs=pl.BlockSpec((M_TILE, W * Cout), lambda i: (i, 0),
                               memory_space=pltpu.MemorySpace.VMEM),
        compiler_params=pltpu.CompilerParams(
            dimension_semantics=("parallel",)),   # shards across v7x's 2 TCs at scale
    )(x_k, w_kcat, b_tiled)

    out_nhwc = out_rows.reshape(N, H, W, Cout)
    # TODO(synk): in a full network keep activations in the lane-packed
    # (N*H, W*C) layout between layers instead of transposing back to NCHW.
    return jnp.transpose(out_nhwc, (0, 3, 1, 2)).astype(x_nchw.dtype)


def reference_conv3x3(x_nchw, weight, bias):
    y = jax.lax.conv_general_dilated(
        x_nchw, weight,
        window_strides=(1, 1),
        padding=((1, 1), (1, 1)),
        dimension_numbers=("NCHW", "OIHW", "NCHW"),
    )
    y = y + bias.reshape(1, -1, 1, 1)
    return jnp.where(y > 0, y, 0.2 * y)


if __name__ == "__main__":
    # Small shapes consistent with the module: Conv3x3(in_dim=4, out_dim=8)
    N, Cin, H, W = 2, 4, 16, 16
    Cout = 8

    key = jax.random.PRNGKey(0)
    kx, kw, kb = jax.random.split(key, 3)

    x = jax.random.normal(kx, (N, Cin, H, W), dtype=jnp.float32)
    # Deterministic parameter init (kaiming-uniform-like range, synthetic).
    fan_in = Cin * 3 * 3
    bound = 1.0 / (fan_in ** 0.5)
    weight = jax.random.uniform(kw, (Cout, Cin, 3, 3), jnp.float32, -bound, bound)
    bias = jax.random.uniform(kb, (Cout,), jnp.float32, -bound, bound)

    out = conv3x3_pallas(x, weight, bias)
    out = jax.block_until_ready(out)

    ref = reference_conv3x3(x, weight, bias)
    assert out.shape == (N, Cout, H, W)
    # bf16 MXU operands (f32 accumulation) -> relaxed tolerance vs. f32 reference.
    assert jnp.allclose(out, ref, atol=5e-2, rtol=5e-2), "mismatch vs reference conv"

    print("KERNEL_OK")
</pallas_src>

<mosaic_0001>
module attributes {stable_mosaic.version = 11 : i64} {
  func.func @conv3x3_leakyrelu_kernel(%arg0: i32, %arg1: memref<32x256xbf16, #tpu.memory_space<vmem>>, %arg2: memref<256x128xbf16, #tpu.memory_space<vmem>>, %arg3: memref<1x128xf32, #tpu.memory_space<vmem>>, %arg4: memref<32x128xf32, #tpu.memory_space<vmem>>) attributes {dimension_semantics = [#tpu.dimension_semantics<parallel>], iteration_bounds = array<i64: 1>, scalar_prefetch = 0 : i64, scratch_operands = 0 : i64, tpu.core_type = #tpu.core_type<tc>, window_params = [{transform_indices = @transform_0, window_bounds = array<i64: 32, 256>}, {pipeline_mode = #tpu.pipeline_mode<synchronous>, transform_indices = @transform_1, window_bounds = array<i64: 256, 128>}, {pipeline_mode = #tpu.pipeline_mode<synchronous>, transform_indices = @transform_2, window_bounds = array<i64: 1, 128>}, {transform_indices = @transform_3, window_bounds = array<i64: 32, 128>}]} {
    %c0 = arith.constant 0 : index
    %c0_0 = arith.constant 0 : index
    %0 = vector.load %arg1[%c0, %c0_0] : memref<32x256xbf16, #tpu.memory_space<vmem>>, vector<32x256xbf16>
    %c0_1 = arith.constant 0 : index
    %c0_2 = arith.constant 0 : index
    %1 = vector.load %arg2[%c0_1, %c0_2] : memref<256x128xbf16, #tpu.memory_space<vmem>>, vector<256x128xbf16>
    %cst = arith.constant dense<0.000000e+00> : vector<32x128xf32>
    %2 = tpu.matmul %0, %1, %cst {dimension_numbers = #tpu.dot_dimension_numbers<[1], [0], [0], [1], [0, 0, 1, 1], [], []>} : vector<32x256xbf16>, vector<256x128xbf16>, vector<32x128xf32> -> vector<32x128xf32>
    %c0_3 = arith.constant 0 : index
    %c0_4 = arith.constant 0 : index
    %3 = vector.load %arg3[%c0_3, %c0_4] : memref<1x128xf32, #tpu.memory_space<vmem>>, vector<1x128xf32>
    %4 = vector.broadcast %3 : vector<1x128xf32> to vector<32x128xf32>
    %5 = arith.addf %2, %4 : vector<32x128xf32>
    %cst_5 = arith.constant 2.000000e-01 : f32
    %6 = vector.broadcast %cst_5 : f32 to vector<32x128xf32>
    %7 = arith.mulf %6, %5 : vector<32x128xf32>
    %8 = arith.maximumf %5, %7 : vector<32x128xf32>
    %c0_6 = arith.constant 0 : index
    %c0_7 = arith.constant 0 : index
    %9 = vector.load %arg4[%c0_6, %c0_7] : memref<32x128xf32, #tpu.memory_space<vmem>>, vector<32x128xf32>
    tpu.vector_store %arg4[%c0_6, %c0_7], %8 {strides = array<i32>} : memref<32x128xf32, #tpu.memory_space<vmem>>, vector<32x128xf32>,
    return
  }
  func.func @transform_0(%arg0: i32) -> (i32, i32) {
    %c0_i32 = arith.constant 0 : i32
    %c0_i32_0 = arith.constant 0 : i32
    return %arg0, %c0_i32 : i32, i32
  }
  func.func @transform_1(%arg0: i32) -> (i32, i32) {
    %c0_i32 = arith.constant 0 : i32
    %c0_i32_0 = arith.constant 0 : i32
    %c0_i32_1 = arith.constant 0 : i32
    return %c0_i32, %c0_i32_0 : i32, i32
  }
  func.func @transform_2(%arg0: i32) -> (i32, i32) {
    %c0_i32 = arith.constant 0 : i32
    %c0_i32_0 = arith.constant 0 : i32
    %c0_i32_1 = arith.constant 0 : i32
    return %c0_i32, %c0_i32_0 : i32, i32
  }
  func.func @transform_3(%arg0: i32) -> (i32, i32) {
    %c0_i32 = arith.constant 0 : i32
    %c0_i32_0 = arith.constant 0 : i32
    return %arg0, %c0_i32 : i32, i32
  }
}

</mosaic_0001>

<bundles_post_ra>
// kernel: tile.8
= control target key start
LH: loop header
LB: loop body
LE: loop exit
PB: predicated region body
PF: predicated region fallthrough
CT: control target
= control target key end

     0   :  { %s28_s0 = inlined_call_operand.vmem [shape: f32[8], index: 0, kind: input, shape index: {}]   ;;  %s29_s1 = inlined_call_operand.vmem [shape: f32[16,8], index: 1, kind: output, shape index: {}]  }
   0x1   :  { %v4_v0 = vld [vmem:[%s28_s0] ss:$0 sm:$0xff] }
   0x2   :  { %5 = vst [vmem:[%s29_s1] sm:$0xff] %v4_v0  ;;  %8 = vst [vmem:[%s29_s1 + $0x8] sm:$0xff] %v4_v0 }

// kernel: tile.9
= control target key start
LH: loop header
LB: loop body
LE: loop exit
PB: predicated region body
PF: predicated region fallthrough
CT: control target
= control target key end

     0   :  { %s131_s10 = smov 120   ;;  %s132_s11 = smov 104   ;;  %vm3_vm0 = vcmask 64512   ;;  %vm9_vm1 = vcmask 1048512   ;;  %vm15_vm2 = vcmask 982912   ;;  %vm21_vm3 = vcmask 917312   ;;  %s207_s0 = inlined_call_operand.vmem [shape: f32[16,8], index: 0, kind: input, shape index: {}]   ;;  %s208_s1 = inlined_call_operand.vmem [shape: f32[1,128], index: 1, kind: output, shape index: {}]  }
   0x1   :  { %v101_v0 = vld [vmem:[%s207_s0 + $0xf] sm:$0x1]   ;;  %v103_v1 = vld [vmem:[%s207_s0 + $0xd] sm:$0x1]   ;;  %v102_v2 = vld [vmem:[%s207_s0 + $0xe] sm:$0x1]  }
   0x2   :  { %7 = vrot.lane.b32.xlu0 %v101_v0, %s131_s10  ;;  %19 = vrot.lane.b32.xlu1 %v103_v1, %s132_s11  ;;  %v104_v3 = vld [vmem:[%s207_s0 + $0xc] sm:$0x1]   ;;  %s133_s16 = smov 112   ;;  %s134_s17 = smov 96   ;;  %v105_v4 = vld [vmem:[%s207_s0 + $0xb] sm:$0x1]  }
   0x3   :  { %v106_v5 = vld [vmem:[%s207_s0 + $0xa] sm:$0x1]   ;;  %v2_v6 = vld [vmem:[%s207_s0] sm:$0x1]   ;;  %s135_s24 = smov 88   ;;  %s136_s25 = smov 80  }
   0x4   :  { %4 = vst.msk [vmem:[#allocation0] sm:$0x1] %vm3_vm0, %v2_v6   ;;  %v107_v7 = vld [vmem:[%s207_s0 + $0x9] sm:$0x1]   ;;  %v108_v8 = vld [vmem:[%s207_s0 + $0x8] sm:$0x1]  }
   0x5   :  { %s137_s30 = smov 72   ;;  %s138_s2 = smov 64   ;;  %v109_v9 = vld [vmem:[%s207_s0 + $0x7] sm:$0x1]   ;;  %v110_v10 = vld [vmem:[%s207_s0 + $0x6] sm:$0x1]  }
   0x6   :  { %13 = vrot.lane.b32.xlu0 %v102_v2, %s133_s16  ;;  %25 = vrot.lane.b32.xlu1 %v104_v3, %s134_s17  ;;  %s139_s7 = smov 56   ;;  %s140_s8 = smov 48   ;;  %v111_v11 = vld [vmem:[%s207_s0 + $0x5] sm:$0x1]   ;;  %v112_v12 = vld [vmem:[%s207_s0 + $0x4] sm:$0x1]  }
   0x7   :  { %s141_s13 = smov 40   ;;  %s142_s14 = smov 32   ;;  %v113_v13 = vld [vmem:[%s207_s0 + $0x3] sm:$0x1]   ;;  %v114_v14 = vld [vmem:[%s207_s0 + $0x2] sm:$0x1]  }
   0x8   :  { %s143_s19 = smov 24   ;;  %s144_s20 = smov 16   ;;  %v115_v15 = vld [vmem:[%s207_s0 + $0x1] sm:$0x1]   ;;  %vm27_vm4 = vcmask 851712   ;;  %vm33_vm5 = vcmask 786112  }
   0x9   :  { %s145_s0 = smov 8   ;;  %vm39_vm6 = vcmask 720512   ;;  %vm45_vm7 = vcmask 654912   ;;  %vm51_vm8 = vcmask 589312   ;;  %vm57_vm9 = vcmask 523712  }
   0xa   :  { %31 = vrot.lane.b32.xlu0 %v105_v4, %s135_s24  ;;  %37 = vrot.lane.b32.xlu1 %v106_v5, %s136_s25  ;;  %vm63_vm10 = vcmask 458112   ;;  %vm69_vm11 = vcmask 392512   ;;  %vm75_vm12 = vcmask 326912   ;;  %vm81_vm13 = vcmask 261312  }
   0xb   :  { %vm87_vm14 = vcmask 195712   ;;  %vm93_vm15 = vcmask 130112  }
   0xe   :  { %43 = vrot.lane.b32.xlu0 %v107_v7, %s137_s30  ;;  %49 = vrot.lane.b32.xlu1 %v108_v8, %s138_s2 }
  0x12   :  { %55 = vrot.lane.b32.xlu0 %v109_v9, %s139_s7  ;;  %61 = vrot.lane.b32.xlu1 %v110_v10, %s140_s8 }
  0x16   :  { %67 = vrot.lane.b32.xlu0 %v111_v11, %s141_s13  ;;  %73 = vrot.lane.b32.xlu1 %v112_v12, %s142_s14 }
  0x1a   :  { %79 = vrot.lane.b32.xlu0 %v113_v13, %s143_s19  ;;  %85 = vrot.lane.b32.xlu1 %v114_v14, %s144_s20 }
  0x1e   :  { %91 = vrot.lane.b32.xlu0 %v115_v15, %s145_s0 }
  0x74   :  { %v8_v16 = vpop.permute.xlu0 %7   ;;  %v20_v17 = vpop.permute.xlu1 %19  }
  0x75   :  { %10 = vst.msk [vmem:[#allocation0] sm:$0x1] %vm9_vm1, %v8_v16  }
  0x78   :  { %v14_v18 = vpop.permute.xlu0 %13   ;;  %v26_v19 = vpop.permute.xlu1 %25  }
  0x79   :  { %16 = vst.msk [vmem:[#allocation0] sm:$0x1] %vm15_vm2, %v14_v18  }
  0x7a   :  { %22 = vst.msk [vmem:[#allocation0] sm:$0x1] %vm21_vm3, %v20_v17  }
  0x7b   :  { %28 = vst.msk [vmem:[#allocation0] sm:$0x1] %vm27_vm4, %v26_v19  }
  0x7c   :  { %v32_v20 = vpop.permute.xlu0 %31   ;;  %v38_v21 = vpop.permute.xlu1 %37  }
  0x7d   :  { %34 = vst.msk [vmem:[#allocation0] sm:$0x1] %vm33_vm5, %v32_v20  }
  0x7e   :  { %40 = vst.msk [vmem:[#allocation0] sm:$0x1] %vm39_vm6, %v38_v21  }
  0x80   :  { %v44_v22 = vpop.permute.xlu0 %43   ;;  %v50_v23 = vpop.permute.xlu1 %49  }
  0x81   :  { %46 = vst.msk [vmem:[#allocation0] sm:$0x1] %vm45_vm7, %v44_v22  }
  0x82   :  { %52 = vst.msk [vmem:[#allocation0] sm:$0x1] %vm51_vm8, %v50_v23  }
  0x84   :  { %v56_v24 = vpop.permute.xlu0 %55   ;;  %v62_v25 = vpop.permute.xlu1 %61  }
  0x85   :  { %58 = vst.msk [vmem:[#allocation0] sm:$0x1] %vm57_vm9, %v56_v24  }
  0x86   :  { %64 = vst.msk [vmem:[#allocation0] sm:$0x1] %vm63_vm10, %v62_v25  }
  0x88   :  { %v68_v26 = vpop.permute.xlu0 %67   ;;  %v74_v27 = vpop.permute.xlu1 %73  }
  0x89   :  { %70 = vst.msk [vmem:[#allocation0] sm:$0x1] %vm69_vm11, %v68_v26  }
  0x8a   :  { %76 = vst.msk [vmem:[#allocation0] sm:$0x1] %vm75_vm12, %v74_v27  }
  0x8c   :  { %v80_v28 = vpop.permute.xlu0 %79   ;;  %v86_v29 = vpop.permute.xlu1 %85  }
  0x8d   :  { %82 = vst.msk [vmem:[#allocation0] sm:$0x1] %vm81_vm13, %v80_v28  }
  0x8e   :  { %88 = vst.msk [vmem:[#allocation0] sm:$0x1] %vm87_vm14, %v86_v29  }
  0x90   :  { %v92_v30 = vpop.permute.xlu0 %91  }
  0x91   :  { %94 = vst.msk [vmem:[#allocation0] sm:$0x1] %vm93_vm15, %v92_v30  }
  0x98   :  { %v98_v31 = vld [vmem:[#allocation0] sm:$0x1] }
  0x99   :  { %100 = vst [vmem:[%s208_s1] sm:$0x1] %v98_v31 }

// kernel: conv3x3_pallas.1
= control target key start
LH: loop header
LB: loop body
LE: loop exit
PB: predicated region body
PF: predicated region fallthrough
CT: control target
= control target key end

     0   :  { %s421_s1 = inlined_call_operand.vmem [shape: bf16[256,128], index: 1, kind: input, shape index: {}]   ;;  %s422_s0 = inlined_call_operand.vmem [shape: bf16[32,256], index: 0, kind: input, shape index: {}]   ;;  %s423_s2 = inlined_call_operand.vmem [shape: f32[1,128], index: 2, kind: input, shape index: {}]   ;;  %s424_s3 = inlined_call_operand.vmem [shape: f32[32,128], index: 3, kind: output, shape index: {}]  }
   0x1   :  { %v304_v0 = vld [vmem:[%s421_s1 + $0x40] sm:$0xff]   ;;  %v306_v2 = vld [vmem:[%s421_s1 + $0x48] sm:$0xff]   ;;  %v308_v4 = vld [vmem:[%s421_s1 + $0x50] sm:$0xff]  }
   0x2   :  { %v305_v1 = vld [vmem:[%s421_s1] sm:$0xff]   ;;  %260 = vmatprep.subr.bf16.mxu0 %v304_v0  ;;  %288 = vmatprep.subr.bf16.mxu1 %v304_v0  ;;  %v307_v3 = vld [vmem:[%s421_s1 + $0x8] sm:$0xff]   ;;  %v309_v5 = vld [vmem:[%s421_s1 + $0x10] sm:$0xff]  }
   0x3   :  { %261 = vmatpush3.bf16.msra.mxu0 %v305_v1  ;;  %296 = vmatpush3.bf16.msra.mxu1 %v305_v1  ;;  %v310_v6 = vld [vmem:[%s421_s1 + $0x58] sm:$0xff]   ;;  %v312_v8 = vld [vmem:[%s421_s1 + $0x60] sm:$0xff]   ;;  %v314_v10 = vld [vmem:[%s421_s1 + $0x68] sm:$0xff]  }
   0x4   :  { %262 = vmatprep.subr.bf16.mxu0 %v306_v2  ;;  %289 = vmatprep.subr.bf16.mxu1 %v306_v2  ;;  %v311_v7 = vld [vmem:[%s421_s1 + $0x18] sm:$0xff]   ;;  %v313_v9 = vld [vmem:[%s421_s1 + $0x20] sm:$0xff]   ;;  %v315_v13 = vld [vmem:[%s421_s1 + $0x28] sm:$0xff]  }
   0x5   :  { %v322_v11 = vld [vmem:[%s422_s0 + $0x4] ss:$8 sps:$4 sm:$0xff]   ;;  %v325_v12 = vld [vmem:[%s422_s0 + $0x14] ss:$8 sps:$4 sm:$0xff]   ;;  %v320_v18 = vld [vmem:[%s422_s0] ss:$8 sps:$4 sm:$0xff]  }
   0x6   :  { %v316_v14 = vld [vmem:[%s421_s1 + $0x70] sm:$0xff]   ;;  %206 = vmatprep.mubr.bf16.mxu0 %v322_v11  ;;  %214 = vmatprep.mubr.bf16.mxu1 %v325_v12  ;;  %v318_v16 = vld [vmem:[%s421_s1 + $0x78] sm:$0xff]   ;;  %v239_v22 = vld [vmem:[%s423_s2] ss:$0 sm:$0xff] }
   0x7   :  { %263 = vmatpush3.bf16.msra.mxu0 %v307_v3  ;;  %297 = vmatpush3.bf16.msra.mxu1 %v307_v3  ;;  %v317_v15 = vld [vmem:[%s421_s1 + $0x30] sm:$0xff]   ;;  %v319_v17 = vld [vmem:[%s421_s1 + $0x38] sm:$0xff]  }
   0x8   :  { %264 = vmatprep.subr.bf16.mxu0 %v308_v4  ;;  %290 = vmatprep.subr.bf16.mxu1 %v308_v4  ;;  %v323_v19 = vld [vmem:[%s422_s0 + $0x10] ss:$8 sps:$4 sm:$0xff]  }
   0xb   :  { %265 = vmatpush3.bf16.msra.mxu0 %v309_v5  ;;  %298 = vmatpush3.bf16.msra.mxu1 %v309_v5 }
   0xc   :  { %266 = vmatprep.subr.bf16.mxu0 %v310_v6  ;;  %291 = vmatprep.subr.bf16.mxu1 %v310_v6 }
   0xf   :  { %267 = vmatpush3.bf16.msra.mxu0 %v311_v7  ;;  %299 = vmatpush3.bf16.msra.mxu1 %v311_v7 }
  0x10   :  { %268 = vmatprep.subr.bf16.mxu0 %v312_v8  ;;  %292 = vmatprep.subr.bf16.mxu1 %v312_v8 }
  0x13   :  { %269 = vmatpush3.bf16.msra.mxu0 %v313_v9  ;;  %300 = vmatpush3.bf16.msra.mxu1 %v313_v9 }
  0x14   :  { %270 = vmatprep.subr.bf16.mxu0 %v314_v10  ;;  %293 = vmatprep.subr.bf16.mxu1 %v314_v10 }
  0x17   :  { %271 = vmatpush3.bf16.msra.mxu0 %v315_v13  ;;  %301 = vmatpush3.bf16.msra.mxu1 %v315_v13 }
  0x18   :  { %272 = vmatprep.subr.bf16.mxu0 %v316_v14  ;;  %294 = vmatprep.subr.bf16.mxu1 %v316_v14 }
  0x1b   :  { %273 = vmatpush3.bf16.msra.mxu0 %v317_v15  ;;  %302 = vmatpush3.bf16.msra.mxu1 %v317_v15 }
  0x1c   :  { %274 = vmatprep.subr.bf16.mxu0 %v318_v16  ;;  %295 = vmatprep.subr.bf16.mxu1 %v318_v16 }
  0x1f   :  { %275 = vmatpush3.bf16.msra.mxu0 %v319_v17  ;;  %303 = vmatpush3.bf16.msra.mxu1 %v319_v17 }
  0x22   :  { %207 = vmatmul.mubr.bf16.vlgmr.msra.gmra.mrb[0].mxu0 %v320_v18  ;;  %215 = vmatmul.mubr.bf16.vlgmr.msra.gmra.mrb[0].mxu1 %v323_v19 }
  0xf5   :  { %v276_v20 = vpop.f32.mrb[0].mxu0  ;;  %v282_v21 = vpop.f32.mrb[0].mxu1 }
  0xf6   :  { %v277_v23 = vpop.f32.mrb[1].mxu0  ;;  %v283_v24 = vpop.f32.mrb[1].mxu1 }
  0xf7   :  { %v278_v25 = vadd.f32 %v277_v23, %v276_v20  ;;  %v284_v26 = vadd.f32 %v283_v24, %v282_v21  ;;  %v279_v27 = vpop.f32.mrb[2].mxu0  ;;  %v285_v28 = vpop.f32.mrb[2].mxu1 }
  0xf8   :  { %v280_v29 = vpop.f32.mrb[3].mxu0  ;;  %v286_v30 = vpop.f32.mrb[3].mxu1 }
  0xf9   :  { %v209_v31 = vadd.f32 %v278_v25, %v239_v22  ;;  %v217_v32 = vadd.f32 %v284_v26, %v239_v22  ;;  %v281_v33 = vadd.f32 %v280_v29, %v279_v27  ;;  %v287_v34 = vadd.f32 %v286_v30, %v285_v28 }
  0xfb   :  { %v223_v35 = vmul.f32 0.2, %v209_v31  ;;  %v225_v36 = vmul.f32 0.2, %v217_v32  ;;  %v212_v37 = vadd.f32 %v281_v33, %v239_v22  ;;  %v220_v38 = vadd.f32 %v287_v34, %v239_v22 }
  0xfd   :  { %v227_v39 = vmax.f32 %v209_v31, %v223_v35  ;;  %v229_v40 = vmax.f32 %v217_v32, %v225_v36  ;;  %v224_v41 = vmul.f32 0.2, %v212_v37  ;;  %v226_v42 = vmul.f32 0.2, %v220_v38 }
  0xff   :  { %231 = vst [vmem:[%s424_s3] sm:$0xff] %v227_v39  ;;  %233 = vst [vmem:[%s424_s3 + $0x10] sm:$0xff] %v229_v40  ;;  %v228_v43 = vmax.f32 %v212_v37, %v224_v41  ;;  %v230_v44 = vmax.f32 %v220_v38, %v226_v42 }
 0x101   :  { %232 = vst [vmem:[%s424_s3 + $0x8] sm:$0xff] %v228_v43  ;;  %234 = vst [vmem:[%s424_s3 + $0x18] sm:$0xff] %v230_v44 }

</bundles_post_ra>
